<compile_context>
chip_gen: v7x
topology: tpu7x:2x2x1
jax: 0.10.0
libtpu: 0.0.40
codegen_flags: <defaults>
</compile_context>

<pallas_src>
import functools

import jax
import jax.numpy as jnp
from jax.experimental import pallas as pl
from jax.experimental.pallas import tpu as pltpu

_LANES = 128
_MAX_TILE_ROWS = 8192          # 8192 rows x 128 lanes x 4 B = 4 MiB per f32 block
_N_BUFFERS = 3                 # requested pipeline depth for streamed inputs
_N_PARALLEL_CHUNKS = 2         # leading "parallel" split (keeps both v7x TCs busy)
_JNP_FALLBACK_ELEMS = 16384    # below this, fused XLA beats kernel dispatch cost


def _cdiv(a, b):
    return -(-a // b)


def _vmem_budget():
    """(block-buffer budget, physical VMEM capacity) in bytes, per generation."""
    try:
        cap = int(pltpu.get_tpu_info().vmem_capacity_bytes)
    except Exception:
        cap = 64 << 20          # v7x per-core size: safe lower bound everywhere
    return min(cap // 2, 40 << 20), cap


def _pick_tile_rows(n_rows, row_bytes, block_budget):
    by_budget = block_budget // max(1, row_bytes * _N_BUFFERS)
    tile = int(min(_MAX_TILE_ROWS, by_budget))
    if tile >= n_rows:
        return n_rows                       # full extent: always a legal block
    return max(8, (tile // 8) * 8)          # keep the sublane dim 8-aligned


def _row_chunking(n_rows, tile_r):
    """Split the row-block reduction into up to _N_PARALLEL_CHUNKS chunks."""
    n_blk = _cdiv(n_rows, tile_r)
    n_chunks = max(1, min(_N_PARALLEL_CHUNKS, n_blk))
    bpc = _cdiv(n_blk, n_chunks)            # row-blocks per chunk
    n_chunks = _cdiv(n_blk, bpc)            # drop empty trailing chunks
    return n_blk, n_chunks, bpc


def _input_spec(block_shape, index_map, n_steps):
    """Input BlockSpec; request deeper pipelining when there is enough streaming."""
    if _N_BUFFERS > 2 and n_steps >= 4:
        try:
            return pl.BlockSpec(block_shape, index_map,
                                pipeline_mode=pl.Buffered(_N_BUFFERS))
        except Exception:
            pass                             # fall back to default double-buffering
    return pl.BlockSpec(block_shape, index_map)


def _vmem_limit(block_bytes, cap):
    return int(min(cap, max(32 << 20, block_bytes + (8 << 20))))


# --------------------------------------------------------------------------
# Kernels
# --------------------------------------------------------------------------
def _abs_sum_kernel(a_ref, b_ref, acc_ref, *, rows_total, tile_r,
                    blocks_per_chunk, mask_rows):
    """Global |a - b| partial sums; one lane-dense (1, 128) partial per chunk."""
    k = pl.program_id(1)

    @pl.when(k == 0)
    def _():
        acc_ref[...] = jnp.zeros_like(acc_ref)

    a = a_ref[...].astype(jnp.float32)
    b = b_ref[...].astype(jnp.float32)
    d = jnp.abs(a - b)

    if mask_rows:  # static: only ragged / clamped-duplicate blocks pay for this
        blk = pl.program_id(0) * blocks_per_chunk + k
        row_ids = blk * tile_r + jax.lax.broadcasted_iota(jnp.int32, d.shape, 0)
        d = jnp.where(row_ids < rows_total, d, 0.0)

    acc_ref[...] += jnp.sum(d, axis=0, keepdims=True)


def _masked_sum_kernel(a_ref, b_ref, m_ref, abs_acc_ref, msk_acc_ref, *,
                       rows_total, tile_r, blocks_per_chunk, mask_rows):
    """Per-batch partial sums of |a-b|*m and of m (refs: (tile_b, tile_r, 128))."""
    k = pl.program_id(2)

    @pl.when(k == 0)
    def _():
        abs_acc_ref[...] = jnp.zeros_like(abs_acc_ref)
        msk_acc_ref[...] = jnp.zeros_like(msk_acc_ref)

    a = a_ref[...].astype(jnp.float32)
    b = b_ref[...].astype(jnp.float32)
    m = m_ref[...].astype(jnp.float32)       # mask streamed in its narrow dtype
    d = jnp.abs(a - b) * m

    if mask_rows:
        blk = pl.program_id(0) * blocks_per_chunk + k
        row_ids = blk * tile_r + jax.lax.broadcasted_iota(jnp.int32, d.shape, 1)
        valid = row_ids < rows_total
        d = jnp.where(valid, d, 0.0)
        m = jnp.where(valid, m, 0.0)

    abs_acc_ref[...] += jnp.sum(d, axis=1, keepdims=True)
    msk_acc_ref[...] += jnp.sum(m, axis=1, keepdims=True)


# --------------------------------------------------------------------------
# Pallas callers
# --------------------------------------------------------------------------
def _call_nomask(x1, x2):
    Rtot, L = x1.shape
    budget, cap = _vmem_budget()
    row_bytes = L * (x1.dtype.itemsize + x2.dtype.itemsize)
    tile_r = _pick_tile_rows(Rtot, row_bytes, budget)
    n_blk, n_chunks, bpc = _row_chunking(Rtot, tile_r)
    mask_rows = (n_chunks * bpc * tile_r != Rtot)

    def in_map(c, k):
        return (jnp.minimum(c * bpc + k, n_blk - 1), 0)

    in_spec = _input_spec((tile_r, L), in_map, n_chunks * bpc)
    out_spec = pl.BlockSpec((None, 1, L), lambda c, k: (c, 0, 0))

    kernel = functools.partial(
        _abs_sum_kernel, rows_total=Rtot, tile_r=tile_r,
        blocks_per_chunk=bpc, mask_rows=mask_rows)

    block_bytes = _N_BUFFERS * tile_r * row_bytes
    bytes_in = x1.size * x1.dtype.itemsize + x2.size * x2.dtype.itemsize
    cost = pl.CostEstimate(flops=3 * x1.size, transcendentals=0,
                           bytes_accessed=bytes_in + n_chunks * L * 4)

    return pl.pallas_call(
        kernel,
        out_shape=jax.ShapeDtypeStruct((n_chunks, 1, L), jnp.float32),
        grid_spec=pltpu.PrefetchScalarGridSpec(
            num_scalar_prefetch=0,
            grid=(n_chunks, bpc),
            in_specs=[in_spec, in_spec],
            out_specs=out_spec,
        ),
        compiler_params=pltpu.CompilerParams(
            dimension_semantics=("parallel", "arbitrary"),
            vmem_limit_bytes=_vmem_limit(block_bytes, cap)),
        cost_estimate=cost,
    )(x1, x2)


def _call_masked(x1, x2, m):
    B, R, L = x1.shape
    budget, cap = _vmem_budget()
    row_bytes = L * (x1.dtype.itemsize + x2.dtype.itemsize + m.dtype.itemsize)
    tile_r = _pick_tile_rows(R, row_bytes, budget)

    tile_b = 1
    if tile_r == R and B > 1:
        # Small per-batch reductions: pack several batches per grid step to
        # amortize the per-step overhead, while keeping >= 2 parallel blocks.
        by_budget = budget // max(1, R * row_bytes * _N_BUFFERS)
        tile_b = max(1, min(B, int(by_budget), _cdiv(B, _N_PARALLEL_CHUNKS)))
    n_bb = _cdiv(B, tile_b)

    n_blk, n_chunks, bpc = _row_chunking(R, tile_r)
    mask_rows = (n_chunks * bpc * tile_r != R)

    def in_map(c, bb, k):
        return (bb, jnp.minimum(c * bpc + k, n_blk - 1), 0)

    n_steps = n_chunks * n_bb * bpc
    in_spec = _input_spec((tile_b, tile_r, L), in_map, n_steps)
    out_spec = pl.BlockSpec((None, tile_b, 1, L), lambda c, bb, k: (c, bb, 0, 0))

    kernel = functools.partial(
        _masked_sum_kernel, rows_total=R, tile_r=tile_r,
        blocks_per_chunk=bpc, mask_rows=mask_rows)

    block_bytes = _N_BUFFERS * tile_b * tile_r * row_bytes
    bytes_in = sum(x.size * x.dtype.itemsize for x in (x1, x2, m))
    cost = pl.CostEstimate(flops=5 * x1.size, transcendentals=0,
                           bytes_accessed=bytes_in + 2 * n_chunks * B * L * 4)

    return pl.pallas_call(
        kernel,
        out_shape=(jax.ShapeDtypeStruct((n_chunks, B, 1, L), jnp.float32),
                   jax.ShapeDtypeStruct((n_chunks, B, 1, L), jnp.float32)),
        grid_spec=pltpu.PrefetchScalarGridSpec(
            num_scalar_prefetch=0,
            grid=(n_chunks, n_bb, bpc),
            in_specs=[in_spec, in_spec, in_spec],
            out_specs=(out_spec, out_spec),
        ),
        compiler_params=pltpu.CompilerParams(
            dimension_semantics=("parallel", "parallel", "arbitrary"),
            vmem_limit_bytes=_vmem_limit(block_bytes, cap)),
        cost_estimate=cost,
    )(x1, x2, m)


# --------------------------------------------------------------------------
# Public API
# --------------------------------------------------------------------------
def _mad_jnp(im1, im2, mask):
    d = jnp.abs(im1.astype(jnp.float32) - im2.astype(jnp.float32))
    if mask is None:
        return jnp.mean(d)
    m = mask.astype(jnp.float32)
    B = im1.shape[0]
    num = (d * m).reshape(B, -1).sum(-1)
    den = m.reshape(B, -1).sum(-1)
    return jnp.mean(num / den)


@functools.partial(jax.jit, static_argnames=("has_mask",))
def _mad_impl(im1, im2, mask, has_mask):
    if im1.size < _JNP_FALLBACK_ELEMS:
        # Tiny metric-sized inputs: fused XLA beats kernel dispatch overhead.
        return _mad_jnp(im1, im2, mask if has_mask else None)

    if not has_mask:
        # Global mean: flatten the whole problem into one lane-dense row space.
        f1 = im1.reshape(-1)
        f2 = im2.reshape(-1)
        T = f1.shape[0]
        Rtot = T // _LANES
        if Rtot == 0:
            return _mad_jnp(im1, im2, None)
        Tp = Rtot * _LANES
        x1 = f1[:Tp].reshape(Rtot, _LANES)   # free bitcast when T % 128 == 0
        x2 = f2[:Tp].reshape(Rtot, _LANES)
        total = jnp.sum(_call_nomask(x1, x2))
        if Tp != T:
            # <128-element ragged tail reduced in plain JAX (no full-array pad).
            total += jnp.sum(jnp.abs(f1[Tp:].astype(jnp.float32)
                                     - f2[Tp:].astype(jnp.float32)))
        return total / jnp.float32(T)

    B = im1.shape[0]
    f1 = im1.reshape(B, -1)
    f2 = im2.reshape(B, -1)
    fm = mask.reshape(B, -1)
    if fm.dtype == jnp.bool_:
        fm = fm.astype(jnp.int8)             # narrow wire dtype; f32 cast in-kernel
    N = f1.shape[1]
    R = N // _LANES
    if R == 0:
        return _mad_jnp(im1, im2, mask)
    Np = R * _LANES
    # Lane-aligned prefix goes through the kernel (free reshape when N % 128
    # == 0); the <128-element per-batch tail is reduced in plain JAX.
    x1 = f1[:, :Np].reshape(B, R, _LANES)
    x2 = f2[:, :Np].reshape(B, R, _LANES)
    xm = fm[:, :Np].reshape(B, R, _LANES)
    abs_p, msk_p = _call_masked(x1, x2, xm)
    abs_sums = jnp.sum(abs_p, axis=(0, 2, 3))   # (B,)
    msk_sums = jnp.sum(msk_p, axis=(0, 2, 3))   # (B,)
    if Np != N:
        t1 = f1[:, Np:].astype(jnp.float32)
        t2 = f2[:, Np:].astype(jnp.float32)
        tm = fm[:, Np:].astype(jnp.float32)
        abs_sums += jnp.sum(jnp.abs(t1 - t2) * tm, axis=-1)
        msk_sums += jnp.sum(tm, axis=-1)
    # Note: a batch whose mask sums to zero yields NaN/Inf, matching torch.
    return jnp.mean(abs_sums / msk_sums)


def mad(im1, im2, mask=None):
    assert im1.shape == im2.shape, "input shape mismatch"
    return _mad_impl(im1, im2, mask, mask is not None)


# --------------------------------------------------------------------------
# Self-test
# --------------------------------------------------------------------------
if __name__ == "__main__":
    key = jax.random.PRNGKey(0)
    k1, k2, k3 = jax.random.split(key, 3)

    def _check(got, want, name):
        got = jax.block_until_ready(got)
        assert jnp.allclose(got, want, rtol=2e-5, atol=1e-6), (name, got, want)

    # --- Main kernel path: lane-aligned N (N % 128 == 0). ------------------
    B, C, H, W = 2, 4, 64, 64
    im1 = jax.random.normal(k1, (B, C, H, W), dtype=jnp.float32)
    im2 = jax.random.normal(k2, (B, C, H, W), dtype=jnp.float32)
    mask_f = (jax.random.uniform(k3, (B, C, H, W)) > 0.5).astype(jnp.float32)
    mask_b = mask_f > 0.5

    _check(mad(im1, im2), jnp.mean(jnp.abs(im1 - im2)), "nomask")

    d = jnp.abs(im1 - im2) * mask_f
    ref_m = jnp.mean(d.reshape(B, -1).sum(-1) / mask_f.reshape(B, -1).sum(-1))
    _check(mad(im1, im2, mask_f), ref_m, "mask_f32")
    _check(mad(im1, im2, mask_b), ref_m, "mask_bool")

    # --- Ragged N (not a multiple of 128): prefix kernel + jnp tail. -------
    B2, C2, H2, W2 = 2, 3, 63, 50
    j1 = jax.random.normal(k1, (B2, C2, H2, W2), dtype=jnp.float32)
    j2 = jax.random.normal(k2, (B2, C2, H2, W2), dtype=jnp.float32)
    jm = (jax.random.uniform(k3, (B2, C2, H2, W2)) > 0.3).astype(jnp.float32)

    _check(mad(j1, j2), jnp.mean(jnp.abs(j1 - j2)), "nomask_ragged")
    dj = jnp.abs(j1 - j2) * jm
    ref_jm = jnp.mean(dj.reshape(B2, -1).sum(-1) / jm.reshape(B2, -1).sum(-1))
    _check(mad(j1, j2, jm), ref_jm, "mask_ragged")

    # --- Stress the chunked / multi-tile reduction (Buffered(3) inputs,
    # --- clamped duplicate blocks, partial row blocks) at a small shape. ----
    _orig_tile = _MAX_TILE_ROWS
    try:
        globals()["_MAX_TILE_ROWS"] = 40
        B3, C3, H3, W3 = 2, 5, 48, 48
        s1 = jax.random.normal(k1, (B3, C3, H3, W3), dtype=jnp.float32)
        s2 = jax.random.normal(k2, (B3, C3, H3, W3), dtype=jnp.float32)
        sm = (jax.random.uniform(k3, (B3, C3, H3, W3)) > 0.4).astype(jnp.float32)
        _check(mad(s1, s2), jnp.mean(jnp.abs(s1 - s2)), "nomask_chunked")
        ds = jnp.abs(s1 - s2) * sm
        ref_sm = jnp.mean(ds.reshape(B3, -1).sum(-1) / sm.reshape(B3, -1).sum(-1))
        _check(mad(s1, s2, sm), ref_sm, "mask_chunked")
    finally:
        globals()["_MAX_TILE_ROWS"] = _orig_tile

    # --- Tiny input: pure-jnp fallback path. --------------------------------
    t1 = jax.random.normal(k1, (2, 4, 16, 16), dtype=jnp.float32)
    t2 = jax.random.normal(k2, (2, 4, 16, 16), dtype=jnp.float32)
    _check(mad(t1, t2), jnp.mean(jnp.abs(t1 - t2)), "jnp_fallback")

    print("KERNEL_OK")
</pallas_src>

<mosaic_0001>
module attributes {stable_mosaic.version = 11 : i64} {
  func.func @_abs_sum_kernel(%arg0: i32, %arg1: i32, %arg2: memref<256x128xf32, #tpu.memory_space<vmem>>, %arg3: memref<256x128xf32, #tpu.memory_space<vmem>>, %arg4: memref<1x1x128xf32, #tpu.memory_space<vmem>>) attributes {dimension_semantics = [#tpu.dimension_semantics<parallel>, #tpu.dimension_semantics<arbitrary>], iteration_bounds = array<i64: 1, 1>, scalar_prefetch = 0 : i64, scratch_operands = 0 : i64, tpu.core_type = #tpu.core_type<tc>, window_params = [{transform_indices = @transform_0, window_bounds = array<i64: 256, 128>}, {transform_indices = @transform_1, window_bounds = array<i64: 256, 128>}, {transform_indices = @transform_2, window_bounds = array<i64: 1, 1, 128>}]} {
    %c0_i32 = arith.constant 0 : i32
    %0 = arith.cmpi eq, %arg1, %c0_i32 : i32
    %1 = arith.extui %0 : i1 to i32
    %c0_i32_0 = arith.constant 0 : i32
    %2 = arith.cmpi ne, %1, %c0_i32_0 : i32
    scf.if %2 {
      %cst_10 = arith.constant 0.000000e+00 : f32
      %15 = vector.broadcast %cst_10 : f32 to vector<1x128xf32>
      %c0_11 = arith.constant 0 : index
      %c0_12 = arith.constant 0 : index
      %c0_13 = arith.constant 0 : index
      %16 = vector.load %arg4[%c0_11, %c0_12, %c0_13] : memref<1x1x128xf32, #tpu.memory_space<vmem>>, vector<1x1x128xf32>
      %17 = vector.shape_cast %16 : vector<1x1x128xf32> to vector<1x128xf32>
      %18 = vector.shape_cast %15 : vector<1x128xf32> to vector<1x1x128xf32>
      tpu.vector_store %arg4[%c0_11, %c0_12, %c0_13], %18 {strides = array<i32>} : memref<1x1x128xf32, #tpu.memory_space<vmem>>, vector<1x1x128xf32>,
    } else {
    }
    %c0 = arith.constant 0 : index
    %c0_1 = arith.constant 0 : index
    %3 = vector.load %arg2[%c0, %c0_1] : memref<256x128xf32, #tpu.memory_space<vmem>>, vector<256x128xf32>
    %c0_2 = arith.constant 0 : index
    %c0_3 = arith.constant 0 : index
    %4 = vector.load %arg3[%c0_2, %c0_3] : memref<256x128xf32, #tpu.memory_space<vmem>>, vector<256x128xf32>
    %5 = arith.subf %3, %4 : vector<256x128xf32>
    %6 = math.absf %5 : vector<256x128xf32>
    %c0_4 = arith.constant 0 : index
    %c0_5 = arith.constant 0 : index
    %c0_6 = arith.constant 0 : index
    %7 = vector.load %arg4[%c0_4, %c0_5, %c0_6] : memref<1x1x128xf32, #tpu.memory_space<vmem>>, vector<1x1x128xf32>
    %8 = vector.shape_cast %7 : vector<1x1x128xf32> to vector<1x128xf32>
    %cst = arith.constant dense<0.000000e+00> : vector<128xf32>
    %9 = vector.multi_reduction <add>, %6, %cst [0] : vector<256x128xf32> to vector<128xf32>
    %10 = vector.shape_cast %9 : vector<128xf32> to vector<1x128xf32>
    %11 = arith.addf %8, %10 : vector<1x128xf32>
    %c0_7 = arith.constant 0 : index
    %c0_8 = arith.constant 0 : index
    %c0_9 = arith.constant 0 : index
    %12 = vector.load %arg4[%c0_7, %c0_8, %c0_9] : memref<1x1x128xf32, #tpu.memory_space<vmem>>, vector<1x1x128xf32>
    %13 = vector.shape_cast %12 : vector<1x1x128xf32> to vector<1x128xf32>
    %14 = vector.shape_cast %11 : vector<1x128xf32> to vector<1x1x128xf32>
    tpu.vector_store %arg4[%c0_7, %c0_8, %c0_9], %14 {strides = array<i32>} : memref<1x1x128xf32, #tpu.memory_space<vmem>>, vector<1x1x128xf32>,
    return
  }
  func.func @transform_0(%arg0: i32, %arg1: i32) -> (i32, i32) {
    %c1_i32 = arith.constant 1 : i32
    %0 = arith.muli %arg0, %c1_i32 : i32
    %1 = arith.addi %0, %arg1 : i32
    %c0_i32 = arith.constant 0 : i32
    %2 = arith.minsi %1, %c0_i32 : i32
    %c0_i32_0 = arith.constant 0 : i32
    %c0_i32_1 = arith.constant 0 : i32
    return %2, %c0_i32_0 : i32, i32
  }
  func.func @transform_1(%arg0: i32, %arg1: i32) -> (i32, i32) {
    %c1_i32 = arith.constant 1 : i32
    %0 = arith.muli %arg0, %c1_i32 : i32
    %1 = arith.addi %0, %arg1 : i32
    %c0_i32 = arith.constant 0 : i32
    %2 = arith.minsi %1, %c0_i32 : i32
    %c0_i32_0 = arith.constant 0 : i32
    %c0_i32_1 = arith.constant 0 : i32
    return %2, %c0_i32_0 : i32, i32
  }
  func.func @transform_2(%arg0: i32, %arg1: i32) -> (i32, i32, i32) {
    %c0_i32 = arith.constant 0 : i32
    %c0_i32_0 = arith.constant 0 : i32
    %c0_i32_1 = arith.constant 0 : i32
    return %arg0, %c0_i32, %c0_i32_0 : i32, i32, i32
  }
}

</mosaic_0001>

<bundles_post_ra>
// kernel: _mad_impl.1
= control target key start
LH: loop header
LB: loop body
LE: loop exit
PB: predicated region body
PF: predicated region fallthrough
CT: control target
= control target key end

     0   :  { %v265_v0 = vmov 0.0   ;;  %s482_s2 = inlined_call_operand.vmem [shape: f32[1,1,128], index: 2, kind: output, shape index: {}]   ;;  %s483_s0 = inlined_call_operand.vmem [shape: f32[256,128], index: 0, kind: input, shape index: {}]   ;;  %s484_s1 = inlined_call_operand.vmem [shape: f32[256,128], index: 1, kind: input, shape index: {}]  }
   0x1   :  { %79 = vst [vmem:[%s482_s2] sm:$0x1] %v265_v0  ;;  %v80_v1 = vld [vmem:[%s483_s0] sm:$0xff]  ;;  %v81_v2 = vld [vmem:[%s483_s0 + $0x8] sm:$0xff]  ;;  %v82_v5 = vld [vmem:[%s483_s0 + $0x10] sm:$0xff] }
   0x2   :  { %v112_v3 = vld [vmem:[%s484_s1] sm:$0xff]  ;;  %v113_v4 = vld [vmem:[%s484_s1 + $0x8] sm:$0xff]  ;;  %v114_v6 = vld [vmem:[%s484_s1 + $0x10] sm:$0xff] }
   0x3   :  { %v144_v7 = vsub.f32 %v80_v1, %v112_v3  ;;  %v145_v8 = vsub.f32 %v81_v2, %v113_v4  ;;  %v83_v9 = vld [vmem:[%s483_s0 + $0x18] sm:$0xff]  ;;  %v146_v11 = vsub.f32 %v82_v5, %v114_v6  ;;  %v84_v12 = vld [vmem:[%s483_s0 + $0x20] sm:$0xff]  ;;  %v85_v17 = vld [vmem:[%s483_s0 + $0x28] sm:$0xff] }
   0x4   :  { %v115_v10 = vld [vmem:[%s484_s1 + $0x18] sm:$0xff]  ;;  %v116_v13 = vld [vmem:[%s484_s1 + $0x20] sm:$0xff]  ;;  %v117_v18 = vld [vmem:[%s484_s1 + $0x28] sm:$0xff] }
   0x5   :  { %v147_v14 = vsub.f32 %v83_v9, %v115_v10  ;;  %v176_v15 = vand.u32 2147483647, %v144_v7  ;;  %v177_v16 = vand.u32 2147483647, %v145_v8  ;;  %v148_v19 = vsub.f32 %v84_v12, %v116_v13  ;;  %v86_v21 = vld [vmem:[%s483_s0 + $0x30] sm:$0xff]  ;;  %v87_v26 = vld [vmem:[%s483_s0 + $0x38] sm:$0xff] }
   0x6   :  { %v178_v20 = vand.u32 2147483647, %v146_v11  ;;  %v118_v22 = vld [vmem:[%s484_s1 + $0x30] sm:$0xff]  ;;  %v149_v23 = vsub.f32 %v85_v17, %v117_v18  ;;  %v119_v27 = vld [vmem:[%s484_s1 + $0x38] sm:$0xff]  ;;  %v88_v31 = vld [vmem:[%s483_s0 + $0x40] sm:$0xff] }
   0x7   :  { %v179_v24 = vand.u32 2147483647, %v147_v14  ;;  %v209_v25 = vadd.f32 %v177_v16, %v176_v15  ;;  %v150_v28 = vsub.f32 %v86_v21, %v118_v22  ;;  %v180_v29 = vand.u32 2147483647, %v148_v19  ;;  %v120_v32 = vld [vmem:[%s484_s1 + $0x40] sm:$0xff]  ;;  %v89_v36 = vld [vmem:[%s483_s0 + $0x48] sm:$0xff] }
   0x8   :  { %v151_v33 = vsub.f32 %v87_v26, %v119_v27  ;;  %v181_v34 = vand.u32 2147483647, %v149_v23  ;;  %v121_v37 = vld [vmem:[%s484_s1 + $0x48] sm:$0xff]  ;;  %v152_v38 = vsub.f32 %v88_v31, %v120_v32  ;;  %v90_v41 = vld [vmem:[%s483_s0 + $0x50] sm:$0xff]  ;;  %v91_v46 = vld [vmem:[%s483_s0 + $0x58] sm:$0xff] }
   0x9   :  { %v210_v30 = vadd.f32 %v209_v25, %v178_v20  ;;  %v182_v39 = vand.u32 2147483647, %v150_v28  ;;  %v122_v42 = vld [vmem:[%s484_s1 + $0x50] sm:$0xff]  ;;  %v153_v43 = vsub.f32 %v89_v36, %v121_v37  ;;  %v123_v47 = vld [vmem:[%s484_s1 + $0x58] sm:$0xff]  ;;  %v92_v51 = vld [vmem:[%s483_s0 + $0x60] sm:$0xff] }
   0xa   :  { %v183_v44 = vand.u32 2147483647, %v151_v33  ;;  %v154_v48 = vsub.f32 %v90_v41, %v122_v42  ;;  %v184_v49 = vand.u32 2147483647, %v152_v38  ;;  %v124_v52 = vld [vmem:[%s484_s1 + $0x60] sm:$0xff]  ;;  %v155_v53 = vsub.f32 %v91_v46, %v123_v47  ;;  %v93_v56 = vld [vmem:[%s483_s0 + $0x68] sm:$0xff] }
   0xb   :  { %v211_v35 = vadd.f32 %v210_v30, %v179_v24  ;;  %v185_v54 = vand.u32 2147483647, %v153_v43  ;;  %v125_v57 = vld [vmem:[%s484_s1 + $0x68] sm:$0xff]  ;;  %v156_v58 = vsub.f32 %v92_v51, %v124_v52  ;;  %v94_v61 = vld [vmem:[%s483_s0 + $0x70] sm:$0xff]  ;;  %v95_v2 = vld [vmem:[%s483_s0 + $0x78] sm:$0xff] }
   0xc   :  { %v186_v59 = vand.u32 2147483647, %v154_v48  ;;  %v126_v62 = vld [vmem:[%s484_s1 + $0x70] sm:$0xff]  ;;  %v157_v63 = vsub.f32 %v93_v56, %v125_v57  ;;  %v187_v0 = vand.u32 2147483647, %v155_v53  ;;  %v127_v3 = vld [vmem:[%s484_s1 + $0x78] sm:$0xff] }
   0xd   :  { %v212_v40 = vadd.f32 %v211_v35, %v180_v29  ;;  %v158_v4 = vsub.f32 %v94_v61, %v126_v62  ;;  %v188_v5 = vand.u32 2147483647, %v156_v58  ;;  %v96_v7 = vld [vmem:[%s483_s0 + $0x80] sm:$0xff]  ;;  %v159_v9 = vsub.f32 %v95_v2, %v127_v3  ;;  %v97_v12 = vld [vmem:[%s483_s0 + $0x88] sm:$0xff]  ;;  %v98_v17 = vld [vmem:[%s483_s0 + $0x90] sm:$0xff] }
   0xe   :  { %v128_v8 = vld [vmem:[%s484_s1 + $0x80] sm:$0xff]  ;;  %v189_v10 = vand.u32 2147483647, %v157_v63  ;;  %v129_v13 = vld [vmem:[%s484_s1 + $0x88] sm:$0xff]  ;;  %v130_v18 = vld [vmem:[%s484_s1 + $0x90] sm:$0xff] }
   0xf   :  { %v213_v45 = vadd.f32 %v212_v40, %v181_v34  ;;  %v160_v14 = vsub.f32 %v96_v7, %v128_v8  ;;  %v190_v15 = vand.u32 2147483647, %v158_v4  ;;  %v161_v19 = vsub.f32 %v97_v12, %v129_v13  ;;  %v99_v22 = vld [vmem:[%s483_s0 + $0x98] sm:$0xff]  ;;  %v100_v27 = vld [vmem:[%s483_s0 + $0xa0] sm:$0xff]  ;;  %v101_v32 = vld [vmem:[%s483_s0 + $0xa8] sm:$0xff] }
  0x10   :  { %v191_v20 = vand.u32 2147483647, %v159_v9  ;;  %v131_v23 = vld [vmem:[%s484_s1 + $0x98] sm:$0xff]  ;;  %v162_v24 = vsub.f32 %v98_v17, %v130_v18  ;;  %v132_v28 = vld [vmem:[%s484_s1 + $0xa0] sm:$0xff]  ;;  %v133_v33 = vld [vmem:[%s484_s1 + $0xa8] sm:$0xff] }
  0x11   :  { %v214_v50 = vadd.f32 %v213_v45, %v182_v39  ;;  %v192_v25 = vand.u32 2147483647, %v160_v14  ;;  %v163_v29 = vsub.f32 %v99_v22, %v131_v23  ;;  %v193_v30 = vand.u32 2147483647, %v161_v19  ;;  %v102_v37 = vld [vmem:[%s483_s0 + $0xb0] sm:$0xff]  ;;  %v103_v42 = vld [vmem:[%s483_s0 + $0xb8] sm:$0xff] }
  0x12   :  { %v164_v34 = vsub.f32 %v100_v27, %v132_v28  ;;  %v194_v35 = vand.u32 2147483647, %v162_v24  ;;  %v134_v38 = vld [vmem:[%s484_s1 + $0xb0] sm:$0xff]  ;;  %v165_v39 = vsub.f32 %v101_v32, %v133_v33  ;;  %v135_v43 = vld [vmem:[%s484_s1 + $0xb8] sm:$0xff]  ;;  %v104_v47 = vld [vmem:[%s483_s0 + $0xc0] sm:$0xff] }
  0x13   :  { %v215_v55 = vadd.f32 %v214_v50, %v183_v44  ;;  %v195_v40 = vand.u32 2147483647, %v163_v29  ;;  %v166_v44 = vsub.f32 %v102_v37, %v134_v38  ;;  %v136_v48 = vld [vmem:[%s484_s1 + $0xc0] sm:$0xff]  ;;  %v105_v52 = vld [vmem:[%s483_s0 + $0xc8] sm:$0xff]  ;;  %v106_v57 = vld [vmem:[%s483_s0 + $0xd0] sm:$0xff] }
  0x14   :  { %v196_v45 = vand.u32 2147483647, %v164_v34  ;;  %v197_v50 = vand.u32 2147483647, %v165_v39  ;;  %v137_v53 = vld [vmem:[%s484_s1 + $0xc8] sm:$0xff]  ;;  %v138_v58 = vld [vmem:[%s484_s1 + $0xd0] sm:$0xff] }
  0x15   :  { %v216_v60 = vadd.f32 %v215_v55, %v184_v49  ;;  %v167_v49 = vsub.f32 %v103_v42, %v135_v43  ;;  %v198_v55 = vand.u32 2147483647, %v166_v44  ;;  %v107_v62 = vld [vmem:[%s483_s0 + $0xd8] sm:$0xff]  ;;  %v108_v3 = vld [vmem:[%s483_s0 + $0xe0] sm:$0xff]  ;;  %v109_v8 = vld [vmem:[%s483_s0 + $0xe8] sm:$0xff] }
  0x16   :  { %v139_v63 = vld [vmem:[%s484_s1 + $0xd8] sm:$0xff]  ;;  %v140_v4 = vld [vmem:[%s484_s1 + $0xe0] sm:$0xff]  ;;  %v141_v9 = vld [vmem:[%s484_s1 + $0xe8] sm:$0xff] }
  0x17   :  { %v217_v1 = vadd.f32 %v216_v60, %v185_v54  ;;  %v168_v54 = vsub.f32 %v104_v47, %v136_v48  ;;  %v199_v60 = vand.u32 2147483647, %v167_v49  ;;  %v110_v13 = vld [vmem:[%s483_s0 + $0xf0] sm:$0xff]  ;;  %v111_v18 = vld [vmem:[%s483_s0 + $0xf8] sm:$0xff]  ;;  %v208_v37 = vld [vmem:[%s482_s2] sm:$0x1] }
  0x18   :  { %v142_v14 = vld [vmem:[%s484_s1 + $0xf0] sm:$0xff]  ;;  %v143_v19 = vld [vmem:[%s484_s1 + $0xf8] sm:$0xff] }
  0x19   :  { %v218_v6 = vadd.f32 %v217_v1, %v186_v59  ;;  %v169_v59 = vsub.f32 %v105_v52, %v137_v53  ;;  %v200_v1 = vand.u32 2147483647, %v168_v54  ;;  %v175_v23 = vsub.f32 %v111_v18, %v143_v19 }
  0x1b   :  { %v219_v11 = vadd.f32 %v218_v6, %v187_v0  ;;  %v170_v0 = vsub.f32 %v106_v57, %v138_v58  ;;  %v201_v6 = vand.u32 2147483647, %v169_v59  ;;  %v207_v28 = vand.u32 2147483647, %v175_v23 }
  0x1d   :  { %v220_v16 = vadd.f32 %v219_v11, %v188_v5  ;;  %v171_v5 = vsub.f32 %v107_v62, %v139_v63  ;;  %v202_v11 = vand.u32 2147483647, %v170_v0 }
  0x1f   :  { %v221_v21 = vadd.f32 %v220_v16, %v189_v10  ;;  %v172_v10 = vsub.f32 %v108_v3, %v140_v4  ;;  %v203_v16 = vand.u32 2147483647, %v171_v5 }
  0x21   :  { %v222_v26 = vadd.f32 %v221_v21, %v190_v15  ;;  %v173_v15 = vsub.f32 %v109_v8, %v141_v9  ;;  %v204_v21 = vand.u32 2147483647, %v172_v10 }
  0x23   :  { %v223_v31 = vadd.f32 %v222_v26, %v191_v20  ;;  %v174_v20 = vsub.f32 %v110_v13, %v142_v14  ;;  %v205_v24 = vand.u32 2147483647, %v173_v15 }
  0x25   :  { %v224_v36 = vadd.f32 %v223_v31, %v192_v25  ;;  %v206_v26 = vand.u32 2147483647, %v174_v20 }
  0x27   :  { %v225_v41 = vadd.f32 %v224_v36, %v193_v30 }
  0x29   :  { %v226_v46 = vadd.f32 %v225_v41, %v194_v35 }
  0x2b   :  { %v227_v51 = vadd.f32 %v226_v46, %v195_v40 }
  0x2d   :  { %v228_v56 = vadd.f32 %v227_v51, %v196_v45 }
  0x2f   :  { %v229_v61 = vadd.f32 %v228_v56, %v197_v50 }
  0x31   :  { %v230_v2 = vadd.f32 %v229_v61, %v198_v55 }
  0x33   :  { %v231_v7 = vadd.f32 %v230_v2, %v199_v60 }
  0x35   :  { %v232_v12 = vadd.f32 %v231_v7, %v200_v1 }
  0x37   :  { %v233_v17 = vadd.f32 %v232_v12, %v201_v6 }
  0x39   :  { %v234_v22 = vadd.f32 %v233_v17, %v202_v11 }
  0x3b   :  { %v235_v25 = vadd.f32 %v234_v22, %v203_v16 }
  0x3d   :  { %v236_v27 = vadd.f32 %v235_v25, %v204_v21 }
  0x3f   :  { %v237_v29 = vadd.f32 %v236_v27, %v205_v24 }
  0x41   :  { %v238_v30 = vadd.f32 %v237_v29, %v206_v26 }
  0x43   :  { %v239_v31 = vadd.f32 %v238_v30, %v207_v28 }
  0x45   :  { %v240_v32 = vrot.slane %v239_v31, 4 }
  0x47   :  { %v241_v33 = vadd.f32 %v240_v32, %v239_v31 }
  0x49   :  { %v242_v34 = vrot.slane %v241_v33, 2 }
  0x4b   :  { %v243_v35 = vadd.f32 %v242_v34, %v241_v33 }
  0x4d   :  { %v244_v36 = vrot.slane %v243_v35, 1 }
  0x4f   :  { %v245_v38 = vadd.f32 %v244_v36, %v243_v35 }
  0x51   :  { %v246_v39 = vadd.f32 %v245_v38, %v208_v37 }
  0x53   :  { %247 = vst [vmem:[%s482_s2] sm:$0x1] %v246_v39 }

</bundles_post_ra>
